<compile_context>
chip_gen: v6e
topology: v6e:2x2x1
jax: 0.10.0
libtpu: 0.0.40
codegen_flags: <defaults>
</compile_context>

<pallas_src>
from functools import partial

import jax
import jax.numpy as jnp
from jax.experimental import pallas as pl
from jax.experimental.pallas import tpu as pltpu


def _round_up(n, m):
    return ((n + m - 1) // m) * m


def _mlp_kernel(x_ref, w1_ref, b1_ref, w2_ref, b2_ref, out_ref):
    # Layer 1: (TB, F) @ (F, Hp) -> f32 accumulate on the MXU.
    h = jnp.dot(x_ref[...], w1_ref[...], preferred_element_type=jnp.float32)
    # Bias + ReLU in f32 on the VPU (v5e has no bf16 VALU).
    h = jnp.maximum(h + b1_ref[...], 0.0)
    # Layer 2: (TB, Hp) @ (Hp, O) -> f32 accumulate.
    q = jnp.dot(h.astype(w2_ref.dtype), w2_ref[...],
                preferred_element_type=jnp.float32)
    out_ref[...] = (q + b2_ref[...]).astype(out_ref.dtype)


def prepare_params(w1, b1, w2, b2, *, compute_dtype=None):
    """One-time param prep, hoisted out of the forward path.

    Pads the hidden dim up to a multiple of 128 (zero padding preserves the
    math: padded hidden units have zero weights + zero bias -> ReLU(0)=0 and
    zero rows in w2).  Optionally casts weights to `compute_dtype`
    (e.g. bf16 on v6e/v7x); biases stay f32 for the VPU epilogue.
    """
    F, H = w1.shape
    O = w2.shape[1]
    Hp = _round_up(H, 128)
    w_dtype = compute_dtype if compute_dtype is not None else w1.dtype
    w1_p = jnp.pad(w1, ((0, 0), (0, Hp - H))).astype(w_dtype)
    b1_p = jnp.pad(jnp.reshape(b1, (1, H)), ((0, 0), (0, Hp - H))).astype(jnp.float32)
    w2_p = jnp.pad(w2, ((0, Hp - H), (0, 0))).astype(w_dtype)
    b2_p = jnp.reshape(b2, (1, O)).astype(jnp.float32)
    return w1_p, b1_p, w2_p, b2_p


def _sublane_min(dtype):
    # bf16 packs 2 rows per sublane -> minimum (16, 128) tile.
    return 16 if dtype == jnp.bfloat16 else 8


@partial(jax.jit, static_argnames=("block_b",))
def net_forward(x, params, *, block_b=None):
    """Forward pass of Net. x: (B, n_feature) -> (B, n_output) f32 math.

    `params` must come from `prepare_params` (pre-padded / pre-cast).
    block_b=None -> single grid step (best for v5e/v6e single-TC);
    set block_b ~ B//2 on v7x to let both TensorCores take a tile.
    """
    w1, b1, w2, b2 = params
    B, F = x.shape
    Hp = w1.shape[1]
    O = w2.shape[1]
    out_dtype = x.dtype

    sub = _sublane_min(w1.dtype)
    if block_b is None:
        TB = _round_up(B, sub)
    else:
        TB = max(sub, _round_up(min(block_b, B), sub))
    Bp = _round_up(B, TB)

    x_p = x if Bp == B else jnp.pad(x, ((0, Bp - B), (0, 0)))
    x_p = x_p.astype(w1.dtype)

    out = pl.pallas_call(
        _mlp_kernel,
        out_shape=jax.ShapeDtypeStruct((Bp, O), out_dtype),
        grid=(Bp // TB,),
        in_specs=[
            # x: tiled over batch.
            pl.BlockSpec((TB, F), lambda i: (i, 0)),
            # Weights / biases: constant block index -> VMEM-resident across
            # grid steps (no re-DMA); with the default one-step grid there is
            # no double-buffer waste either.
            pl.BlockSpec((F, Hp), lambda i: (0, 0)),
            pl.BlockSpec((1, Hp), lambda i: (0, 0)),
            pl.BlockSpec((Hp, O), lambda i: (0, 0)),
            pl.BlockSpec((1, O), lambda i: (0, 0)),
        ],
        # Full (unpadded) output extent: tiny masked store beats a 16x padded
        # writeback + separate slice pass.
        out_specs=pl.BlockSpec((TB, O), lambda i: (i, 0)),
        compiler_params=pltpu.CompilerParams(
            dimension_semantics=("parallel",)),
    )(x_p, w1, b1, w2, b2)

    # Padded ROWS carry bias-propagated junk -> keep the row slice (fused by jit).
    return out if Bp == B else out[:B]


def stack_params(params_a, params_b):
    """Stack two prepared param sets along a leading size-2 axis."""
    return tuple(jnp.stack([a, b]) for a, b in zip(params_a, params_b))


@jax.jit
def net_forward_pair(x_pair, params_pair):
    """Fused DQN forward: eval-net and target-net in ONE pallas_call.

    x_pair: (2, B, F) -- [states, next_states].
    params_pair: stacked prepared params, each (2, ...).
    Returns (2, B, O) -> [q_eval, q_next].
    """
    w1, b1, w2, b2 = params_pair
    _, B, F = x_pair.shape
    Hp = w1.shape[2]
    O = w2.shape[2]
    out_dtype = x_pair.dtype

    sub = _sublane_min(w1.dtype)
    Bp = _round_up(B, sub)
    x_p = x_pair if Bp == B else jnp.pad(x_pair, ((0, 0), (0, Bp - B), (0, 0)))
    x_p = x_p.astype(w1.dtype)

    out = pl.pallas_call(
        _mlp_kernel,
        out_shape=jax.ShapeDtypeStruct((2, Bp, O), out_dtype),
        grid=(2,),
        in_specs=[
            # Leading "which net" dim is squeezed (None) so the kernel body is
            # identical to the single-net case.
            pl.BlockSpec((None, Bp, F), lambda n: (n, 0, 0)),
            pl.BlockSpec((None, F, Hp), lambda n: (n, 0, 0)),
            pl.BlockSpec((None, 1, Hp), lambda n: (n, 0, 0)),
            pl.BlockSpec((None, Hp, O), lambda n: (n, 0, 0)),
            pl.BlockSpec((None, 1, O), lambda n: (n, 0, 0)),
        ],
        out_specs=pl.BlockSpec((None, Bp, O), lambda n: (n, 0, 0)),
        # The two nets are independent -> one per TensorCore on v7x;
        # a cheap 2-step serial loop (still one launch) on v5e/v6e.
        compiler_params=pltpu.CompilerParams(
            dimension_semantics=("parallel",)),
    )(x_p, w1, b1, w2, b2)

    return out if Bp == B else out[:, :B]


def init_net_params(key, n_feature, n_hidden, n_output, dtype=jnp.float32):
    """Deterministic init mimicking PyTorch nn.Linear default
    (U[-1/sqrt(fan_in), +1/sqrt(fan_in)])."""
    k1, k2, k3, k4 = jax.random.split(key, 4)
    bound1 = 1.0 / jnp.sqrt(jnp.asarray(n_feature, dtype))
    bound2 = 1.0 / jnp.sqrt(jnp.asarray(n_hidden, dtype))
    # Stored as [in, out] (transposed vs PyTorch's [out, in]).
    w1 = jax.random.uniform(k1, (n_feature, n_hidden), dtype, -bound1, bound1)
    b1 = jax.random.uniform(k2, (1, n_hidden), dtype, -bound1, bound1)
    w2 = jax.random.uniform(k3, (n_hidden, n_output), dtype, -bound2, bound2)
    b2 = jax.random.uniform(k4, (1, n_output), dtype, -bound2, bound2)
    return w1, b1, w2, b2


if __name__ == "__main__":
    n_feature, n_hidden, n_output = 16, 32, 8
    batch = 32  # typical DQN replay minibatch

    key = jax.random.PRNGKey(0)
    kx, kx2, kp, kp2 = jax.random.split(key, 4)
    x = jax.random.normal(kx, (batch, n_feature), jnp.float32)
    w1, b1, w2, b2 = init_net_params(kp, n_feature, n_hidden, n_output)

    # Pure-JAX reference (same math as the PyTorch forward).
    ref = jnp.maximum(x @ w1 + b1, 0.0) @ w2 + b2

    # f32 path (one-time param prep, jitted forward).
    params_f32 = prepare_params(w1, b1, w2, b2)
    out = jax.block_until_ready(net_forward(x, params_f32))
    assert out.shape == (batch, n_output)
    assert jnp.allclose(out, ref, atol=1e-5, rtol=1e-5)

    # bf16 activations/weights, f32 accumulate (v6e/v7x fast path).
    params_bf16 = prepare_params(w1, b1, w2, b2, compute_dtype=jnp.bfloat16)
    out_bf16 = jax.block_until_ready(net_forward(x, params_bf16))
    assert out_bf16.shape == (batch, n_output)
    assert jnp.allclose(out_bf16, ref, atol=5e-2, rtol=5e-2)

    # Fused eval-net / target-net forward (q_eval, q_next) in one launch.
    w1t, b1t, w2t, b2t = init_net_params(kp2, n_feature, n_hidden, n_output)
    x_next = jax.random.normal(kx2, (batch, n_feature), jnp.float32)
    ref_next = jnp.maximum(x_next @ w1t + b1t, 0.0) @ w2t + b2t
    params_pair = stack_params(params_f32,
                               prepare_params(w1t, b1t, w2t, b2t))
    out_pair = jax.block_until_ready(
        net_forward_pair(jnp.stack([x, x_next]), params_pair))
    assert out_pair.shape == (2, batch, n_output)
    assert jnp.allclose(out_pair[0], ref, atol=1e-5, rtol=1e-5)
    assert jnp.allclose(out_pair[1], ref_next, atol=1e-5, rtol=1e-5)

    print("KERNEL_OK")
</pallas_src>

<mosaic_0001>
module attributes {stable_mosaic.version = 11 : i64} {
  func.func @_mlp_kernel(%arg0: i32, %arg1: memref<32x16xf32, #tpu.memory_space<vmem>>, %arg2: memref<16x128xf32, #tpu.memory_space<vmem>>, %arg3: memref<1x128xf32, #tpu.memory_space<vmem>>, %arg4: memref<128x8xf32, #tpu.memory_space<vmem>>, %arg5: memref<1x8xf32, #tpu.memory_space<vmem>>, %arg6: memref<32x8xf32, #tpu.memory_space<vmem>>) attributes {dimension_semantics = [#tpu.dimension_semantics<parallel>], iteration_bounds = array<i64: 1>, scalar_prefetch = 0 : i64, scratch_operands = 0 : i64, tpu.core_type = #tpu.core_type<tc>, window_params = [{transform_indices = @transform_0, window_bounds = array<i64: 32, 16>}, {pipeline_mode = #tpu.pipeline_mode<synchronous>, transform_indices = @transform_1, window_bounds = array<i64: 16, 128>}, {pipeline_mode = #tpu.pipeline_mode<synchronous>, transform_indices = @transform_2, window_bounds = array<i64: 1, 128>}, {pipeline_mode = #tpu.pipeline_mode<synchronous>, transform_indices = @transform_3, window_bounds = array<i64: 128, 8>}, {pipeline_mode = #tpu.pipeline_mode<synchronous>, transform_indices = @transform_4, window_bounds = array<i64: 1, 8>}, {transform_indices = @transform_5, window_bounds = array<i64: 32, 8>}]} {
    %c0 = arith.constant 0 : index
    %c0_0 = arith.constant 0 : index
    %0 = vector.load %arg1[%c0, %c0_0] : memref<32x16xf32, #tpu.memory_space<vmem>>, vector<32x16xf32>
    %c0_1 = arith.constant 0 : index
    %c0_2 = arith.constant 0 : index
    %1 = vector.load %arg2[%c0_1, %c0_2] : memref<16x128xf32, #tpu.memory_space<vmem>>, vector<16x128xf32>
    %cst = arith.constant dense<0.000000e+00> : vector<32x128xf32>
    %2 = tpu.matmul %0, %1, %cst {dimension_numbers = #tpu.dot_dimension_numbers<[1], [0], [0], [1], [0, 0, 1, 1], [], []>} : vector<32x16xf32>, vector<16x128xf32>, vector<32x128xf32> -> vector<32x128xf32>
    %c0_3 = arith.constant 0 : index
    %c0_4 = arith.constant 0 : index
    %3 = vector.load %arg3[%c0_3, %c0_4] : memref<1x128xf32, #tpu.memory_space<vmem>>, vector<1x128xf32>
    %4 = vector.broadcast %3 : vector<1x128xf32> to vector<32x128xf32>
    %5 = arith.addf %2, %4 : vector<32x128xf32>
    %cst_5 = arith.constant 0.000000e+00 : f32
    %6 = vector.broadcast %cst_5 : f32 to vector<32x128xf32>
    %7 = arith.maximumf %5, %6 : vector<32x128xf32>
    %c0_6 = arith.constant 0 : index
    %c0_7 = arith.constant 0 : index
    %8 = vector.load %arg4[%c0_6, %c0_7] : memref<128x8xf32, #tpu.memory_space<vmem>>, vector<128x8xf32>
    %cst_8 = arith.constant dense<0.000000e+00> : vector<32x8xf32>
    %9 = tpu.matmul %7, %8, %cst_8 {dimension_numbers = #tpu.dot_dimension_numbers<[1], [0], [0], [1], [0, 0, 1, 1], [], []>} : vector<32x128xf32>, vector<128x8xf32>, vector<32x8xf32> -> vector<32x8xf32>
    %c0_9 = arith.constant 0 : index
    %c0_10 = arith.constant 0 : index
    %10 = vector.load %arg5[%c0_9, %c0_10] : memref<1x8xf32, #tpu.memory_space<vmem>>, vector<1x8xf32>
    %11 = vector.broadcast %10 : vector<1x8xf32> to vector<32x8xf32>
    %12 = arith.addf %9, %11 : vector<32x8xf32>
    %c0_11 = arith.constant 0 : index
    %c0_12 = arith.constant 0 : index
    %13 = vector.load %arg6[%c0_11, %c0_12] : memref<32x8xf32, #tpu.memory_space<vmem>>, vector<32x8xf32>
    tpu.vector_store %arg6[%c0_11, %c0_12], %12 {strides = array<i32>} : memref<32x8xf32, #tpu.memory_space<vmem>>, vector<32x8xf32>,
    return
  }
  func.func @transform_0(%arg0: i32) -> (i32, i32) {
    %c0_i32 = arith.constant 0 : i32
    %c0_i32_0 = arith.constant 0 : i32
    return %arg0, %c0_i32 : i32, i32
  }
  func.func @transform_1(%arg0: i32) -> (i32, i32) {
    %c0_i32 = arith.constant 0 : i32
    %c0_i32_0 = arith.constant 0 : i32
    %c0_i32_1 = arith.constant 0 : i32
    return %c0_i32, %c0_i32_0 : i32, i32
  }
  func.func @transform_2(%arg0: i32) -> (i32, i32) {
    %c0_i32 = arith.constant 0 : i32
    %c0_i32_0 = arith.constant 0 : i32
    %c0_i32_1 = arith.constant 0 : i32
    return %c0_i32, %c0_i32_0 : i32, i32
  }
  func.func @transform_3(%arg0: i32) -> (i32, i32) {
    %c0_i32 = arith.constant 0 : i32
    %c0_i32_0 = arith.constant 0 : i32
    %c0_i32_1 = arith.constant 0 : i32
    return %c0_i32, %c0_i32_0 : i32, i32
  }
  func.func @transform_4(%arg0: i32) -> (i32, i32) {
    %c0_i32 = arith.constant 0 : i32
    %c0_i32_0 = arith.constant 0 : i32
    %c0_i32_1 = arith.constant 0 : i32
    return %c0_i32, %c0_i32_0 : i32, i32
  }
  func.func @transform_5(%arg0: i32) -> (i32, i32) {
    %c0_i32 = arith.constant 0 : i32
    %c0_i32_0 = arith.constant 0 : i32
    return %arg0, %c0_i32 : i32, i32
  }
}

</mosaic_0001>

<bundles_post_ra>
// kernel: net_forward.1
= control target key start
LH: loop header
LB: loop body
LE: loop exit
PB: predicated region body
PF: predicated region fallthrough
CT: control target
= control target key end

     0   :  { %vm33_vm0 = vcmask 130048   ;;  %vm243_vm1 = vcmask 64512   ;;  %s450_s1 = inlined_call_operand.vmem [shape: f32[16,128], index: 1, kind: input, shape index: {}]   ;;  %s451_s0 = inlined_call_operand.vmem [shape: f32[32,16], index: 0, kind: input, shape index: {}]   ;;  %s452_s3 = inlined_call_operand.vmem [shape: f32[128,8], index: 3, kind: input, shape index: {}]   ;;  %s453_s2 = inlined_call_operand.vmem [shape: f32[1,128], index: 2, kind: input, shape index: {}]   ;;  %s454_s4 = inlined_call_operand.vmem [shape: f32[1,8], index: 4, kind: input, shape index: {}]   ;;  %s455_s5 = inlined_call_operand.vmem [shape: f32[32,8], index: 5, kind: output, shape index: {}]  }
   0x1   :  { %v25_v0 = vld [vmem:[%s450_s1 + $0x8] sm:$0xff]  ;;  %v24_v1 = vld [vmem:[%s450_s1] sm:$0xff]  ;;  %v150_v4 = vld [vmem:[%s452_s3 + $0x78] sm:$0xff] }
   0x2   :  { %v20_v2 = vld [vmem:[%s451_s0] sm:$0xff]  ;;  %284 = vmatprep.subr.mxu0 %v25_v0  ;;  %v21_v3 = vld [vmem:[%s451_s0 + $0x8] sm:$0xff]  ;;  %v149_v5 = vld [vmem:[%s452_s3 + $0x70] sm:$0xff]  ;;  %294 = vmatprep.subr.mxu1 %v150_v4 }
   0x3   :  { %288 = vmatprep.mubr.msk.f32.mxu0 %vm33_vm0, %v20_v2  ;;  %285 = vmatpush3.msra.mxu0 %v25_v0  ;;  %v22_v6 = vld [vmem:[%s451_s0 + $0x10] sm:$0xff]  ;;  %v148_v7 = vld [vmem:[%s452_s3 + $0x68] sm:$0xff]  ;;  %v23_v8 = vld [vmem:[%s451_s0 + $0x18] sm:$0xff] }
   0x4   :  { %286 = vmatprep.subr.mxu0 %v24_v1  ;;  %295 = vmatpush3.msra.mxu1 %v150_v4  ;;  %v147_v9 = vld [vmem:[%s452_s3 + $0x60] sm:$0xff]  ;;  %v146_v10 = vld [vmem:[%s452_s3 + $0x58] sm:$0xff]  ;;  %v145_v11 = vld [vmem:[%s452_s3 + $0x50] sm:$0xff] }
   0x5   :  { %287 = vmatpush3.msra.mxu0 %v24_v1  ;;  %296 = vmatprep.subr.mxu1 %v149_v5  ;;  %v144_v12 = vld [vmem:[%s452_s3 + $0x48] sm:$0xff]  ;;  %v143_v13 = vld [vmem:[%s452_s3 + $0x40] sm:$0xff]  ;;  %v142_v14 = vld [vmem:[%s452_s3 + $0x38] sm:$0xff] }
   0x6   :  { %289 = vmatmul.mubr.msk.f32.vlgmr.msra.gmra.mxu0 %vm33_vm0, %v21_v3  ;;  %297 = vmatpush3.msra.mxu1 %v149_v5  ;;  %v141_v15 = vld [vmem:[%s452_s3 + $0x30] sm:$0xff]  ;;  %v140_v16 = vld [vmem:[%s452_s3 + $0x28] sm:$0xff]  ;;  %v139_v17 = vld [vmem:[%s452_s3 + $0x20] sm:$0xff] }
   0x7   :  { %291 = vmatprep.mubr.msk.f32.mxu0 %vm33_vm0, %v22_v6  ;;  %298 = vmatprep.subr.mxu1 %v148_v7  ;;  %v138_v18 = vld [vmem:[%s452_s3 + $0x18] sm:$0xff]  ;;  %v137_v19 = vld [vmem:[%s452_s3 + $0x10] sm:$0xff]  ;;  %v136_v20 = vld [vmem:[%s452_s3 + $0x8] sm:$0xff] }
   0x8   :  { %299 = vmatpush3.msra.mxu1 %v148_v7  ;;  %v135_v21 = vld [vmem:[%s452_s3] sm:$0xff] }
   0x9   :  { %300 = vmatprep.subr.mxu1 %v147_v9  ;;  %v252_v22 = vld [vmem:[%s453_s2] ss:$0 sm:$0xff] }
   0xa   :  { %292 = vmatmul.mubr.msk.f32.gmra.mxu0 %vm33_vm0, %v23_v8  ;;  %301 = vmatpush3.msra.mxu1 %v147_v9  ;;  %v257_v35 = vld [vmem:[%s454_s4] ss:$0 sm:$0xff] }
   0xb   :  { %302 = vmatprep.subr.mxu1 %v146_v10 }
   0xc   :  { %303 = vmatpush3.msra.mxu1 %v146_v10 }
   0xd   :  { %304 = vmatprep.subr.mxu1 %v145_v11 }
   0xe   :  { %305 = vmatpush3.msra.mxu1 %v145_v11 }
   0xf   :  { %306 = vmatprep.subr.mxu1 %v144_v12 }
  0x10   :  { %307 = vmatpush3.msra.mxu1 %v144_v12 }
  0x11   :  { %308 = vmatprep.subr.mxu1 %v143_v13 }
  0x12   :  { %309 = vmatpush3.msra.mxu1 %v143_v13 }
  0x13   :  { %310 = vmatprep.subr.mxu1 %v142_v14 }
  0x14   :  { %311 = vmatpush3.msra.mxu1 %v142_v14 }
  0x15   :  { %312 = vmatprep.subr.mxu1 %v141_v15 }
  0x16   :  { %313 = vmatpush3.msra.mxu1 %v141_v15 }
  0x17   :  { %314 = vmatprep.subr.mxu1 %v140_v16 }
  0x18   :  { %315 = vmatpush3.msra.mxu1 %v140_v16 }
  0x19   :  { %316 = vmatprep.subr.mxu1 %v139_v17 }
  0x1a   :  { %317 = vmatpush3.msra.mxu1 %v139_v17 }
  0x1b   :  { %318 = vmatprep.subr.mxu1 %v138_v18 }
  0x1c   :  { %319 = vmatpush3.msra.mxu1 %v138_v18 }
  0x1d   :  { %320 = vmatprep.subr.mxu1 %v137_v19 }
  0x1e   :  { %321 = vmatpush3.msra.mxu1 %v137_v19 }
  0x1f   :  { %322 = vmatprep.subr.mxu1 %v136_v20 }
  0x20   :  { %323 = vmatpush3.msra.mxu1 %v136_v20 }
  0x21   :  { %324 = vmatprep.subr.mxu1 %v135_v21 }
  0x22   :  { %325 = vmatpush3.msra.mxu1 %v135_v21 }
  0xc6   :  { %v290_v23 = vpop.f32.mrf.mxu0 }
  0xc7   :  { %v118_v24 = vadd.f32 %v290_v23, %v252_v22 }
  0xc8   :  { %v112_v25 = vpop.f32.mrf.mxu0 }
  0xc9   :  { %v113_v26 = vadd.f32 %v252_v22, %v112_v25  ;;  %v132_v29 = vmax.f32 %v118_v24, 0.0 }
  0xca   :  { %v293_v27 = vpop.f32.mrf.mxu0 }
  0xcb   :  { %v131_v28 = vmax.f32 %v113_v26, 0.0  ;;  %v128_v30 = vadd.f32 %v293_v27, %v252_v22 }
  0xcc   :  { %v122_v31 = vpop.f32.mrf.mxu0 }
  0xcd   :  { %v123_v32 = vadd.f32 %v252_v22, %v122_v31  ;;  %326 = vmatprep.mubr.f32.mxu1 %v131_v28  ;;  %v134_v34 = vmax.f32 %v128_v30, 0.0 }
  0xce   :  { %327 = vmatmul.mubr.f32.vlgmr.msra.gmra.mxu1 %v132_v29 }
  0xcf   :  { %v133_v33 = vmax.f32 %v123_v32, 0.0 }
  0xd1   :  { %329 = vmatprep.mubr.f32.mxu1 %v133_v33 }
  0xd2   :  { %330 = vmatmul.mubr.f32.gmra.mxu1 %v134_v34 }
 0x18e   :  { %v328_v36 = vpop.f32.mrf.mxu1 }
 0x18f   :  { %v230_v37 = vadd.f32 %v328_v36, %v257_v35 }
 0x190   :  { %v224_v38 = vpop.f32.mrf.mxu1 }
 0x191   :  { %245 = vst.msk [vmem:[%s455_s5 + $0x8] sm:$0xff] %vm243_vm1, %v230_v37  ;;  %v225_v39 = vadd.f32 %v257_v35, %v224_v38 }
 0x192   :  { %v331_v40 = vpop.f32.mrf.mxu1 }
 0x193   :  { %244 = vst.msk [vmem:[%s455_s5] sm:$0xff] %vm243_vm1, %v225_v39  ;;  %v240_v41 = vadd.f32 %v331_v40, %v257_v35 }
 0x194   :  { %v234_v42 = vpop.f32.mrf.mxu1 }
 0x195   :  { %247 = vst.msk [vmem:[%s455_s5 + $0x18] sm:$0xff] %vm243_vm1, %v240_v41  ;;  %v235_v43 = vadd.f32 %v257_v35, %v234_v42 }
 0x197   :  { %246 = vst.msk [vmem:[%s455_s5 + $0x10] sm:$0xff] %vm243_vm1, %v235_v43 }

</bundles_post_ra>
